<compile_context>
chip_gen: v5e
topology: v5e:2x2
jax: 0.10.0
libtpu: 0.0.40
codegen_flags: <defaults>
</compile_context>

<pallas_src>
import functools
import math

import jax
import jax.numpy as jnp
import numpy as np
from jax.experimental import pallas as pl
from jax.experimental.pallas import tpu as pltpu


def _round_up(x, m):
    return ((x + m - 1) // m) * m


def _hw_config():
    """Returns (max_core_split, target_tile_bytes_per_input, vmem_limit_bytes)."""
    kind = ""
    try:
        kind = jax.devices()[0].device_kind.lower()
    except Exception:
        pass
    if "v5 lite" in kind or "v5e" in kind or "v5lite" in kind:
        # v5e: 1 TC, ~0.82 TB/s HBM, small (16 MiB) default scoped VMEM.
        return 1, 1 << 20, None
    if "v7" in kind or "tpu7" in kind:
        # v7x: 2 TCs share the chip; 64 MiB physical VMEM per TC.
        return 2, 4 << 20, 48 << 20
    if "v6" in kind:
        # v6e: 1 TC, 128 MiB physical VMEM.
        return 1, 4 << 20, 64 << 20
    # Unknown chip: conservative settings that are safe everywhere.
    return 1, 2 << 20, None


def _joints_mse_kernel(*refs, scale, use_weight, tr, n_rows, nblocks, need_mask):
    if use_weight:
        pred_ref, gt_ref, w_ref, out_ref, acc_ref = refs
    else:
        pred_ref, gt_ref, out_ref, acc_ref = refs
        w_ref = None

    c = pl.program_id(0)          # core-split ("parallel") axis
    s = pl.program_id(1)          # reduction (row-tile) axis
    steps = pl.num_programs(1)

    @pl.when(s == 0)
    def _init():
        acc_ref[...] = jnp.zeros_like(acc_ref)

    blk = c * steps + s           # logical (unclamped) row-block index

    diff = pred_ref[...].astype(jnp.float32) - gt_ref[...].astype(jnp.float32)
    if use_weight:
        # Whole weight vector is resident in VMEM; slice the (tr, 1) per-row
        # weights for this block (clamped so the slice is always in-bounds).
        start = pl.multiple_of(jnp.minimum(blk, nblocks - 1) * tr, 8)
        w = w_ref[pl.ds(start, tr), :].astype(jnp.float32)
        diff = diff * w

    sq = diff * diff
    if need_mask:
        # Mask tail / overflow rows (no wrapper-side padding of the inputs).
        rows = jax.lax.broadcasted_iota(jnp.int32, (tr, 1), 0) + blk * tr
        sq = jnp.where(rows < n_rows, sq, 0.0)

    # Element-wise row-group sum into a small (8, HW) accumulator — pure VPU.
    hw = acc_ref.shape[1]
    acc_ref[...] += jnp.sum(sq.reshape(tr // 8, 8, hw), axis=0)

    @pl.when(s == steps - 1)
    def _finalize():
        out_ref[...] = (jnp.sum(acc_ref[...]) * scale).reshape(1, 1, 1)


def joints_mse_loss(output, target, target_weight=None, use_target_weight=False):
    """output/target: [B, J, ...spatial...]; target_weight: [B, J] or [B, J, 1]."""
    assert output.shape == target.shape
    B = int(output.shape[0])
    J = int(output.shape[1])
    HW = int(np.prod(output.shape[2:])) if output.ndim > 2 else 1
    R = B * J
    N = R * HW
    # True element count for normalization (never a padded count).
    scale = 0.5 / float(N)

    pred = output.reshape(R, HW)
    gt = target.reshape(R, HW)

    # Lane-dense folding when HW is not a 128-multiple (only without per-row
    # weights, since the fold mixes rows of different (b, j)).
    Rk, HWk = R, HW
    if (not use_target_weight) and HWk % 128 != 0:
        f = 128 // math.gcd(HWk, 128)
        if f > 1 and Rk % f == 0:
            Rk, HWk = Rk // f, HWk * f
            pred = pred.reshape(Rk, HWk)
            gt = gt.reshape(Rk, HWk)

    nc_max, target_tile_bytes, vmem_limit = _hw_config()

    itemsize = np.dtype(output.dtype).itemsize
    rows_fit = max(8, ((target_tile_bytes // max(1, HWk * itemsize)) // 8) * 8)
    tr = min(_round_up(Rk, 8), rows_fit)

    nblocks = -(-Rk // tr)                    # cdiv
    nc = nc_max if nblocks >= nc_max else 1   # core split only when it pays
    steps = -(-nblocks // nc)

    # Tail handling without padding the big tensors: clamp overflow block
    # indices to the last real block; mask rows >= Rk in-kernel.
    need_clamp = nc * steps > nblocks
    need_mask = need_clamp or (nblocks * tr != Rk)
    if need_clamp:
        idx_map = lambda c, s: (jnp.minimum(c * steps + s, nblocks - 1), 0)
    else:
        idx_map = lambda c, s: (c * steps + s, 0)

    inputs = [pred, gt]
    in_specs = [
        pl.BlockSpec((tr, HWk), idx_map),
        pl.BlockSpec((tr, HWk), idx_map),
    ]

    w_bytes = 0
    if use_target_weight:
        if target_weight is None:
            raise ValueError("use_target_weight=True requires target_weight")
        w = target_weight.reshape(R, 1)
        w_bytes = R * np.dtype(w.dtype).itemsize
        Rw = nblocks * tr
        if Rw != R:
            # Padding the tiny (R, 1) weight is negligible (the heatmaps are
            # never padded); padded rows are masked anyway.
            w = jnp.pad(w, ((0, Rw - R), (0, 0)))
        inputs.append(w)
        # Whole weight vector lives untiled in VMEM; sliced in-kernel.
        in_specs.append(pl.BlockSpec(memory_space=pltpu.MemorySpace.VMEM))

    kernel = functools.partial(
        _joints_mse_kernel, scale=scale, use_weight=use_target_weight,
        tr=tr, n_rows=Rk, nblocks=nblocks, need_mask=need_mask)

    cp_kwargs = dict(dimension_semantics=("parallel", "arbitrary"))
    if vmem_limit is not None:
        cp_kwargs["vmem_limit_bytes"] = int(vmem_limit)

    cost = pl.CostEstimate(
        flops=int((4 if use_target_weight else 3) * N),
        transcendentals=0,
        bytes_accessed=int(2 * N * itemsize + w_bytes + 4 * nc))

    partials = pl.pallas_call(
        kernel,
        out_shape=jax.ShapeDtypeStruct((nc, 1, 1), jnp.float32),
        grid=(nc, steps),
        in_specs=in_specs,
        out_specs=pl.BlockSpec((1, 1, 1), lambda c, s: (c, 0, 0)),
        scratch_shapes=[pltpu.VMEM((8, HWk), jnp.float32)],
        compiler_params=pltpu.CompilerParams(**cp_kwargs),
        cost_estimate=cost,
    )(*inputs)

    # Combine the (at most 2) per-core partial losses.
    return jnp.sum(partials)


class JointsMSELoss:
    """JAX/Pallas port of the PyTorch JointsMSELoss module."""

    def __init__(self, use_target_weight=False):
        self.use_target_weight = use_target_weight

    def __call__(self, output, target, target_weight=None):
        return joints_mse_loss(output, target, target_weight,
                               use_target_weight=self.use_target_weight)


def _ref_loss(output, target, target_weight=None, use_target_weight=False):
    """Pure-JAX reference with the exact PyTorch JointsMSELoss semantics."""
    Bb, Jj = output.shape[0], output.shape[1]
    p = output.reshape(Bb, Jj, -1)
    g = target.reshape(Bb, Jj, -1)
    loss = 0.0
    for j in range(Jj):
        pj, gj = p[:, j], g[:, j]
        if use_target_weight:
            wj = target_weight[:, j].reshape(Bb, 1)
            pj = pj * wj
            gj = gj * wj
        loss = loss + 0.5 * jnp.mean((pj - gj) ** 2)
    return loss / Jj


if __name__ == "__main__":
    key = jax.random.PRNGKey(0)
    B, J, H, W = 2, 4, 16, 16  # batch=2, joints=4, 16x16 heatmaps
    k1, k2, k3 = jax.random.split(key, 3)
    output = jax.random.normal(k1, (B, J, H, W), dtype=jnp.float32)
    target = jax.random.normal(k2, (B, J, H, W), dtype=jnp.float32)
    target_weight = jax.random.uniform(k3, (B, J, 1), dtype=jnp.float32)

    # Default path (use_target_weight=False).
    loss_mod = JointsMSELoss()
    loss = loss_mod(output, target)
    jax.block_until_ready(loss)
    ref = _ref_loss(output, target)
    assert np.allclose(np.asarray(loss), np.asarray(ref), rtol=1e-5, atol=1e-6), (loss, ref)

    # Weighted path.
    loss_mod_w = JointsMSELoss(use_target_weight=True)
    loss_w = loss_mod_w(output, target, target_weight)
    jax.block_until_ready(loss_w)
    ref_w = _ref_loss(output, target, target_weight, use_target_weight=True)
    assert np.allclose(np.asarray(loss_w), np.asarray(ref_w), rtol=1e-5, atol=1e-6), (loss_w, ref_w)

    print("KERNEL_OK")
</pallas_src>

<mosaic_0001>
module attributes {stable_mosaic.version = 11 : i64} {
  func.func @_joints_mse_kernel(%arg0: i32, %arg1: i32, %arg2: memref<8x256xf32, #tpu.memory_space<vmem>>, %arg3: memref<8x256xf32, #tpu.memory_space<vmem>>, %arg4: memref<1x1x1xf32, #tpu.memory_space<vmem>>, %arg5: memref<8x256xf32, #tpu.memory_space<vmem>>) attributes {dimension_semantics = [#tpu.dimension_semantics<parallel>, #tpu.dimension_semantics<arbitrary>], iteration_bounds = array<i64: 1, 1>, scalar_prefetch = 0 : i64, scratch_operands = 1 : i64, tpu.core_type = #tpu.core_type<tc>, window_params = [{transform_indices = @transform_0, window_bounds = array<i64: 8, 256>}, {transform_indices = @transform_1, window_bounds = array<i64: 8, 256>}, {transform_indices = @transform_2, window_bounds = array<i64: 1, 1, 1>}]} {
    %c0_i32 = arith.constant 0 : i32
    %0 = arith.cmpi eq, %arg1, %c0_i32 : i32
    %1 = arith.extui %0 : i1 to i32
    %c0_i32_0 = arith.constant 0 : i32
    %2 = arith.cmpi ne, %1, %c0_i32_0 : i32
    scf.if %2 {
      %cst_10 = arith.constant 0.000000e+00 : f32
      %15 = vector.broadcast %cst_10 : f32 to vector<8x256xf32>
      %c0_11 = arith.constant 0 : index
      %c0_12 = arith.constant 0 : index
      %16 = vector.load %arg5[%c0_11, %c0_12] : memref<8x256xf32, #tpu.memory_space<vmem>>, vector<8x256xf32>
      tpu.vector_store %arg5[%c0_11, %c0_12], %15 {strides = array<i32>} : memref<8x256xf32, #tpu.memory_space<vmem>>, vector<8x256xf32>,
    } else {
    }
    %c0 = arith.constant 0 : index
    %c0_1 = arith.constant 0 : index
    %3 = vector.load %arg2[%c0, %c0_1] : memref<8x256xf32, #tpu.memory_space<vmem>>, vector<8x256xf32>
    %c0_2 = arith.constant 0 : index
    %c0_3 = arith.constant 0 : index
    %4 = vector.load %arg3[%c0_2, %c0_3] : memref<8x256xf32, #tpu.memory_space<vmem>>, vector<8x256xf32>
    %5 = arith.subf %3, %4 : vector<8x256xf32>
    %6 = arith.mulf %5, %5 : vector<8x256xf32>
    %c0_4 = arith.constant 0 : index
    %c0_5 = arith.constant 0 : index
    %7 = vector.load %arg5[%c0_4, %c0_5] : memref<8x256xf32, #tpu.memory_space<vmem>>, vector<8x256xf32>
    %8 = vector.shape_cast %6 : vector<8x256xf32> to vector<1x8x256xf32>
    %cst = arith.constant dense<0.000000e+00> : vector<8x256xf32>
    %9 = vector.multi_reduction <add>, %8, %cst [0] : vector<1x8x256xf32> to vector<8x256xf32>
    %10 = arith.addf %7, %9 : vector<8x256xf32>
    %c0_6 = arith.constant 0 : index
    %c0_7 = arith.constant 0 : index
    %11 = vector.load %arg5[%c0_6, %c0_7] : memref<8x256xf32, #tpu.memory_space<vmem>>, vector<8x256xf32>
    tpu.vector_store %arg5[%c0_6, %c0_7], %10 {strides = array<i32>} : memref<8x256xf32, #tpu.memory_space<vmem>>, vector<8x256xf32>,
    %c0_i32_8 = arith.constant 0 : i32
    %12 = arith.cmpi eq, %arg1, %c0_i32_8 : i32
    %13 = arith.extui %12 : i1 to i32
    %c0_i32_9 = arith.constant 0 : i32
    %14 = arith.cmpi ne, %13, %c0_i32_9 : i32
    scf.if %14 {
      %c0_10 = arith.constant 0 : index
      %c0_11 = arith.constant 0 : index
      %15 = vector.load %arg5[%c0_10, %c0_11] : memref<8x256xf32, #tpu.memory_space<vmem>>, vector<8x256xf32>
      %16 = vector.shape_cast %15 : vector<8x256xf32> to vector<1x8x256xf32>
      %cst_12 = arith.constant dense<0.000000e+00> : vector<1xf32>
      %17 = vector.multi_reduction <add>, %16, %cst_12 [1, 2] : vector<1x8x256xf32> to vector<1xf32>
      %18 = vector.shape_cast %17 : vector<1xf32> to vector<1x1x1xf32>
      %19 = vector.extract %18[0, 0, 0] : f32 from vector<1x1x1xf32>
      %cst_13 = arith.constant 2.44140625E-4 : f32
      %20 = arith.mulf %19, %cst_13 : f32
      %21 = vector.broadcast %20 : f32 to vector<1x1x1xf32>
      %c0_14 = arith.constant 0 : index
      %c0_15 = arith.constant 0 : index
      %c0_16 = arith.constant 0 : index
      %22 = vector.load %arg4[%c0_14, %c0_15, %c0_16] : memref<1x1x1xf32, #tpu.memory_space<vmem>>, vector<1x1x1xf32>
      tpu.vector_store %arg4[%c0_14, %c0_15, %c0_16], %21 {strides = array<i32>} : memref<1x1x1xf32, #tpu.memory_space<vmem>>, vector<1x1x1xf32>,
    } else {
    }
    return
  }
  func.func @transform_0(%arg0: i32, %arg1: i32) -> (i32, i32) {
    %c1_i32 = arith.constant 1 : i32
    %0 = arith.muli %arg0, %c1_i32 : i32
    %1 = arith.addi %0, %arg1 : i32
    %c0_i32 = arith.constant 0 : i32
    %c0_i32_0 = arith.constant 0 : i32
    return %1, %c0_i32 : i32, i32
  }
  func.func @transform_1(%arg0: i32, %arg1: i32) -> (i32, i32) {
    %c1_i32 = arith.constant 1 : i32
    %0 = arith.muli %arg0, %c1_i32 : i32
    %1 = arith.addi %0, %arg1 : i32
    %c0_i32 = arith.constant 0 : i32
    %c0_i32_0 = arith.constant 0 : i32
    return %1, %c0_i32 : i32, i32
  }
  func.func @transform_2(%arg0: i32, %arg1: i32) -> (i32, i32, i32) {
    %c0_i32 = arith.constant 0 : i32
    %c0_i32_0 = arith.constant 0 : i32
    %c0_i32_1 = arith.constant 0 : i32
    return %arg0, %c0_i32, %c0_i32_0 : i32, i32, i32
  }
}

</mosaic_0001>

<bundles_post_ra>
// kernel: tpu_custom_call.1
= control target key start
LH: loop header
LB: loop body
LE: loop exit
PB: predicated region body
PF: predicated region fallthrough
CT: control target
= control target key end

     0   :  { %7 = vsyncpa [#allocation4], 0  ;;  %s219_s0 = inlined_call_operand.hbm [shape: f32[8,256], index: 0, kind: input, shape index: {}]   ;;  %s220_s1 = inlined_call_operand.hbm [shape: f32[8,256], index: 1, kind: input, shape index: {}]   ;;  %s221_s2 = inlined_call_operand.hbm [shape: f32[1,1,1], index: 2, kind: output, shape index: {}]  }
   0x1   :  { %8 = vsyncpa [#allocation7], 0 }
   0x2   :  { %9 = vsyncpa [#allocation5], 0  ;;  %s19_s11 = sshll.u32 %s219_s0, 4  ;;  %s192_s12 = smov [#allocation3]   ;;  %s20_s11 = int_to_ptr.hbm [resolvable:$true] %s19_s11 }
   0x3   :  { %s21_s13 = sshll.u32 %s192_s12, 4  ;;  %s34_s16 = sshll.u32 %s220_s1, 4  ;;  %s22_s13 = int_to_ptr.vmem [resolvable:$true] %s21_s13  ;;  %s35_s16 = int_to_ptr.hbm [resolvable:$true] %s34_s16 }
   0x4   :  { %24 = dma.hbm_to_vmem [thread:$0]  %s20_s11, 256, %s22_s13, [#allocation4]  }
   0x5   :  { %s193_s17 = smov [#allocation6]  }
   0x6   :  { %s36_s18 = sshll.u32 %s193_s17, 4  ;;  %s37_s18 = int_to_ptr.vmem [resolvable:$true] %s36_s18 }
   0x7   :  { %39 = dma.hbm_to_vmem [thread:$0]  %s35_s16, 256, %s37_s18, [#allocation7]  }
   0x8   :  { %186 = dma.done.wait [#allocation4], 256  }
   0x9   :  { %187 = vsyncadd [#allocation4], 4294967040 }
   0xa   :  { %188 = dma.done.wait [#allocation7], 256  }
   0xb   :  { %189 = vsyncadd [#allocation7], 4294967040  ;;  %v56_v0 = vld [vmem:[#allocation3] sm:$0xff]  ;;  %v57_v1 = vld [vmem:[#allocation3 + $0x8] sm:$0xff]  ;;  %s194_s0 = smov [#allocation8]   ;;  %s98_s21 = sshll.u32 %s221_s2, 4  ;;  %s99_s21 = int_to_ptr.hbm [resolvable:$true] %s98_s21 }
   0xc   :  { %v58_v2 = vld [vmem:[#allocation6] sm:$0xff]  ;;  %v59_v3 = vld [vmem:[#allocation6 + $0x8] sm:$0xff]  ;;  %s96_s1 = sshll.u32 %s194_s0, 4  ;;  %vm89_vm0 = vcmask 0   ;;  %s97_s1 = int_to_ptr.vmem [resolvable:$true] %s96_s1 }
   0xd   :  { %v60_v4 = vsub.f32 %v56_v0, %v58_v2  ;;  %v61_v5 = vsub.f32 %v57_v1, %v59_v3 }
   0xf   :  { %v62_v6 = vmul.f32 %v60_v4, %v60_v4  ;;  %v63_v7 = vmul.f32 %v61_v5, %v61_v5 }
  0x11   :  { %v77_v8 = vadd.f32 %v63_v7, %v62_v6 }
  0x13   :  { %78 = vadd.xlane.f32.xlu0 %v77_v8 }
  0x86   :  { %v79_v9 = vpop.xlane.xlu0 %78 }
  0x87   :  { %v80_v10 = vrot.slane %v79_v9, 4 }
  0x89   :  { %v81_v11 = vadd.f32 %v80_v10, %v79_v9 }
  0x8b   :  { %v82_v12 = vrot.slane %v81_v11, 2 }
  0x8d   :  { %v83_v13 = vadd.f32 %v82_v12, %v81_v11 }
  0x8f   :  { %v84_v14 = vrot.slane %v83_v13, 1 }
  0x91   :  { %v85_v15 = vadd.f32 %v84_v14, %v83_v13 }
  0x93   :  { %109 = vpush %v85_v15 }
  0xc4   :  { %s110_s22 = spop %109 }
  0xc5   :  { %s87_s23 = smul.f32 0.00024414063, %s110_s22 }
  0xc7   :  { %v88_v16 = vstv %s87_s23 }
  0xc8   :  { %90 = vst.msk [vmem:[#allocation8] sm:$0x1] %vm89_vm0, %v88_v16 }
  0xc9   :  { %101 = dma.vmem_to_hbm [thread:$0]  %s97_s1, 16, %s99_s21, [#allocation5]  }
  0xca   :  { %190 = dma.done.wait [#allocation5], 16  }
  0xcb   :  { %191 = vsyncadd [#allocation5], 4294967280 }
  0xcc   :  { %106 = vsyncpa [#allocation4], 1 }
  0xcd   :  { %107 = vsyncpa [#allocation7], 1 }
  0xce   :  { %108 = vsyncpa [#allocation5], 1 }

</bundles_post_ra>
